<compile_context>
chip_gen: v6e
topology: v6e:2x2x1
jax: 0.10.0
libtpu: 0.0.40
codegen_flags: <defaults>
</compile_context>

<pallas_src>
import math

import jax
import jax.numpy as jnp
from jax.experimental import pallas as pl
from jax.experimental.pallas import tpu as pltpu

# marginal_prob_std: VP-SDE with linear beta schedule (matches
# NoiseScheduleVP(schedule='linear') used by ScoreBase). Forward uses element [1].
# TODO(synk): marginal_prob_std is an external callable in the PyTorch module; the
# linear VP schedule is baked in here.
BETA0, BETA1 = 0.1, 20.0

IN_W = 128          # lane-dense packed input / output width


def marginal_prob_std(t):
    log_mean = -0.25 * t * t * (BETA1 - BETA0) - 0.5 * t * BETA0
    alpha = jnp.exp(log_mean)
    std = jnp.sqrt(1.0 - jnp.exp(2.0 * log_mean))
    return alpha, std


def _silu(v):
    return v * jax.nn.sigmoid(v)


def _round_up(n, m):
    return ((n + m - 1) // m) * m


# ----------------------------------------------------------------------------- kernel
def make_mlp_score_kernel(adim, E):
    E2, E4 = E // 2, E // 4

    def kernel(inp_ref, emw_ref, vecs_ref, b1w_ref, b23w_ref, dw_ref, o_ref):
        f32, bf16 = jnp.float32, jnp.bfloat16

        inp = inp_ref[...]                       # [TB, 128] f32: x | t | cond | 0
        inp_bf = inp.astype(bf16)                # single cast reused by two dots
        t = inp[:, adim:adim + 1]                # [TB, 1] f32

        emw = emw_ref[...]                       # [E2+E+128, E] bf16 slab
        e1w = emw[0:E2, :]                       # [E2, E]  embed Linear(E/2 -> E)
        e2w_w = emw[E2:E2 + E, :]                # [E,  E]  widened (cols >= E2 zero)
        pcw_w = emw[E2 + E:, :]                  # [128, E] pre_sort_condition widened
                                                 #   (nonzero only at cond rows/cols)

        vecs = vecs_ref[...]                     # [8, H] f32 bias / fourier slab
        e1b = vecs[0:1, :E]
        ecb = vecs[1:2, :E]                      # [e2b | pcb]
        wf = vecs[2:3, :E4]                      # Gaussian Fourier W
        b1b = vecs[3:4, :]
        b2b = vecs[4:5, :]
        b3b = vecs[5:6, :]
        db = vecs[6:7, :IN_W]                    # decoder bias, 128-lane padded

        # GaussianFourierProjection folded into split dots of the first embed Linear
        # (no lane concat needed).
        xp = t * wf * (2.0 * math.pi)            # [TB, E4]
        sn, cs = jnp.sin(xp), jnp.cos(xp)
        emid = _silu(
            jnp.dot(sn.astype(bf16), e1w[:E4, :], preferred_element_type=f32)
            + jnp.dot(cs.astype(bf16), e1w[E4:, :], preferred_element_type=f32)
            + e1b)                               # [TB, E]

        # [embed_t | embed_c] from ONE pair of widened dots: zero halves of e2w_w /
        # pcw_w make the sum exactly equal the concatenation; condition is read
        # straight from the lane-dense input slab (no cond slice).
        eec = _silu(
            jnp.dot(emid.astype(bf16), e2w_w, preferred_element_type=f32)
            + jnp.dot(inp_bf, pcw_w, preferred_element_type=f32)
            + ecb)                               # [TB, E]

        # block1 on cat([x, embed_t, embed_c]) via two dots (x-part through the
        # 128-row zero-padded weight), then two 256x256 layers.
        b1w = b1w_ref[...]                       # [128+E, H] bf16
        h = _silu(
            jnp.dot(inp_bf, b1w[:IN_W, :], preferred_element_type=f32)
            + jnp.dot(eec.astype(bf16), b1w[IN_W:, :], preferred_element_type=f32)
            + b1b)
        h = _silu(jnp.dot(h.astype(bf16), b23w_ref[0], preferred_element_type=f32) + b2b)
        h = _silu(jnp.dot(h.astype(bf16), b23w_ref[1], preferred_element_type=f32) + b3b)

        # Decoder: 128-lane padded weight -> full unmasked 128-lane store.
        out = jnp.dot(h.astype(bf16), dw_ref[...], preferred_element_type=f32) + db

        # out / marginal_prob_std(t)[1][:, None]   (fast EUP reciprocal)
        log_mean = -0.25 * t * t * (BETA1 - BETA0) - 0.5 * t * BETA0
        std = jnp.sqrt(1.0 - jnp.exp(2.0 * log_mean))
        o_ref[...] = out * pl.reciprocal(std, approx=True)

    return kernel


# ----------------------------------------------------------------------- params / packing
def init_params(key, sdim, adim, embed_dim=32, hdim=256):
    """Deterministic f32 master weights matching the PyTorch module's shapes."""
    E, E2, E4, H = embed_dim, embed_dim // 2, embed_dim // 4, hdim

    def linear(k, fan_in, fan_out):
        k1, k2 = jax.random.split(k)
        bound = 1.0 / math.sqrt(fan_in)
        w = jax.random.uniform(k1, (fan_in, fan_out), jnp.float32, -bound, bound)
        b = jax.random.uniform(k2, (1, fan_out), jnp.float32, -bound, bound)
        return w, b

    keys = jax.random.split(key, 8)
    p = {}
    p["wf"] = (jax.random.normal(keys[0], (1, E4)) * 30.0).astype(jnp.float32)
    p["e1w"], p["e1b"] = linear(keys[1], E2, E)        # Linear(E/2, E)
    p["e2w"], p["e2b"] = linear(keys[2], E, E2)        # Linear(E, E/2)
    p["pcw"], p["pcb"] = linear(keys[3], sdim, E2)     # Dense(sdim, E/2)
    p["b1w"], p["b1b"] = linear(keys[4], adim + E, H)  # Linear(adim+E, 256)
    p["b2w"], p["b2b"] = linear(keys[5], H, H)
    p["b3w"], p["b3b"] = linear(keys[6], H, H)
    p["dw"], p["db"] = linear(keys[7], H, adim)        # Dense(256, adim)
    return p


def pack_params(params, adim, sdim, E, H):
    """Pack once, reuse across every forward call (sampling loop).  All matmul
    weights are pre-cast to bf16 and zero-padded so the kernel sees lane-dense
    operands and never slices x / cond out of the packed input slab."""
    E2, E4 = E // 2, E // 4
    assert adim + 1 + sdim <= IN_W, "x | t | condition must fit in 128 lanes"
    assert H >= IN_W and H >= E

    # Embed-path matrix slab (bf16): e1w | widened e2w | 128-row widened pcw.
    emw = jnp.zeros((E2 + E + IN_W, E), jnp.float32)
    emw = emw.at[0:E2, :].set(params["e1w"])
    emw = emw.at[E2:E2 + E, :E2].set(params["e2w"])            # right half stays zero
    emw = emw.at[E2 + E + adim + 1:E2 + E + adim + 1 + sdim, E2:E].set(params["pcw"])
    emw = emw.astype(jnp.bfloat16)

    # Vector slab (f32): biases + Fourier W + 128-lane-padded decoder bias.
    vecs = jnp.zeros((8, H), jnp.float32)
    vecs = vecs.at[0, :E].set(params["e1b"][0])
    vecs = vecs.at[1, :E2].set(params["e2b"][0])
    vecs = vecs.at[1, E2:E].set(params["pcb"][0])
    vecs = vecs.at[2, :E4].set(params["wf"][0])
    vecs = vecs.at[3].set(params["b1b"][0])
    vecs = vecs.at[4].set(params["b2b"][0])
    vecs = vecs.at[5].set(params["b3b"][0])
    vecs = vecs.at[6, :adim].set(params["db"][0])

    # block1 weight (bf16): x-rows padded into the 128-lane input-slab layout,
    # followed by the E rows for [embed_t | embed_c].
    b1w = jnp.zeros((IN_W + E, H), jnp.float32)
    b1w = b1w.at[0:adim, :].set(params["b1w"][:adim])
    b1w = b1w.at[IN_W:IN_W + E, :].set(params["b1w"][adim:])
    b1w = b1w.astype(jnp.bfloat16)

    b23w = jnp.stack([params["b2w"], params["b3w"]]).astype(jnp.bfloat16)  # [2, H, H]

    # Decoder weight (bf16), zero-padded to 128 output lanes.
    dw = jnp.zeros((H, IN_W), jnp.float32)
    dw = dw.at[:, :adim].set(params["dw"])
    dw = dw.astype(jnp.bfloat16)

    return dict(emw=emw, vecs=vecs, b1w=b1w, b23w=b23w, dw=dw)


# --------------------------------------------------------------------------- wrapper
def mlp_score_forward(packed, x, t, condition, *, tb_max=1024, small_max=256):
    emw, vecs, b1w = packed["emw"], packed["vecs"], packed["b1w"]
    b23w, dw = packed["b23w"], packed["dw"]

    B, adim = x.shape
    sdim = condition.shape[-1]
    E = b1w.shape[0] - IN_W
    H = b23w.shape[-1]
    E4 = E // 4

    x = x.astype(jnp.float32)
    cond = condition.astype(jnp.float32)
    t1 = jnp.asarray(t, jnp.float32).reshape(B)

    # Tile selection: tiny batches take the no-grid fully-VMEM path; everything else
    # gets >= 2 grid steps (so v7x's two TensorCores both get work) capped at tb_max.
    if B <= small_max:
        TB = _round_up(B, 8)
        n_steps = 1
    else:
        TB = min(tb_max, _round_up(-(-B // 2), 8))
        n_steps = -(-B // TB)
    Bp = n_steps * TB

    # Single lane-dense [Bp, 128] input slab: x | t | cond | zeros.  Padded rows get
    # t = 1.0 so std(t) != 0 in the (discarded) padded lanes.
    inp = jnp.zeros((Bp, IN_W), jnp.float32)
    inp = inp.at[:, adim].set(1.0)
    inp = inp.at[:B, :adim].set(x)
    inp = inp.at[:B, adim].set(t1)
    inp = inp.at[:B, adim + 1:adim + 1 + sdim].set(cond)

    kernel = make_mlp_score_kernel(adim, E)
    operands = (inp, emw, vecs, b1w, b23w, dw)
    out_shape = jax.ShapeDtypeStruct((Bp, IN_W), jnp.float32)

    weight_bytes = (emw.size + b1w.size + b23w.size + dw.size) * 2 + vecs.size * 4
    cost = pl.CostEstimate(
        flops=2 * Bp * (2 * E4 * E + E * E + IN_W * E + (IN_W + E) * H + 2 * H * H + H * IN_W),
        transcendentals=Bp * (2 * E4 + 2 * E + 3 * H + 2),
        bytes_accessed=weight_bytes + Bp * IN_W * 4 * 2)

    if n_steps == 1:
        # Tiny batch: single invocation, no grid / pipelining scaffolding; every
        # operand lives in VMEM for the whole call.
        vmem = pl.BlockSpec(memory_space=pltpu.MemorySpace.VMEM)
        out = pl.pallas_call(
            kernel,
            out_shape=out_shape,
            in_specs=[vmem] * len(operands),
            out_specs=vmem,
            cost_estimate=cost,
        )(*operands)
    else:
        batch_spec = pl.BlockSpec((TB, IN_W), lambda i: (i, 0))
        out = pl.pallas_call(
            kernel,
            out_shape=out_shape,
            grid=(n_steps,),
            in_specs=[
                batch_spec,
                pl.BlockSpec(emw.shape, lambda i: (0, 0)),
                pl.BlockSpec(vecs.shape, lambda i: (0, 0)),
                pl.BlockSpec(b1w.shape, lambda i: (0, 0)),
                pl.BlockSpec(b23w.shape, lambda i: (0, 0, 0)),
                pl.BlockSpec(dw.shape, lambda i: (0, 0)),
            ],
            out_specs=batch_spec,
            compiler_params=pltpu.CompilerParams(
                # "parallel" lets the batch axis shard across v7x's two TensorCores.
                dimension_semantics=("parallel",),
                # Raise above v5e's 16 MiB default so the larger batch tile fits.
                vmem_limit_bytes=32 * 1024 * 1024),
            cost_estimate=cost,
        )(*operands)

    return out[:B, :adim]


# ------------------------------------------------------------------------- references
def reference_forward_bf16(params, x, t, condition):
    """Pure-JAX reference mirroring the kernel's bf16-weight / f32-accumulate math."""
    f32, bf16 = jnp.float32, jnp.bfloat16

    def lin(a, w, b):
        return jnp.dot(a.astype(bf16), w.astype(bf16), preferred_element_type=f32) + b

    xp = t[:, None] * params["wf"] * (2.0 * math.pi)
    gf = jnp.concatenate([jnp.sin(xp), jnp.cos(xp)], axis=-1)
    e = _silu(lin(gf, params["e1w"], params["e1b"]))
    e = _silu(lin(e, params["e2w"], params["e2b"]))
    ec = _silu(lin(condition, params["pcw"], params["pcb"]))
    h = jnp.concatenate([x, e, ec], axis=-1)
    h = _silu(lin(h, params["b1w"], params["b1b"]))
    h = _silu(lin(h, params["b2w"], params["b2b"]))
    h = _silu(lin(h, params["b3w"], params["b3b"]))
    out = lin(h, params["dw"], params["db"])
    _, std = marginal_prob_std(t)
    return out / std[:, None]


def reference_forward_f32(params, x, t, condition):
    """Full-f32 reference mirroring the PyTorch forward (loose sanity check only)."""
    xp = t[:, None] * params["wf"] * (2.0 * math.pi)
    gf = jnp.concatenate([jnp.sin(xp), jnp.cos(xp)], axis=-1)
    e = _silu(gf @ params["e1w"] + params["e1b"])
    e = _silu(e @ params["e2w"] + params["e2b"])
    ec = _silu(condition @ params["pcw"] + params["pcb"])
    h = jnp.concatenate([x, e, ec], axis=-1)
    h = _silu(h @ params["b1w"] + params["b1b"])
    h = _silu(h @ params["b2w"] + params["b2b"])
    h = _silu(h @ params["b3w"] + params["b3b"])
    out = h @ params["dw"] + params["db"]
    _, std = marginal_prob_std(t)
    return out / std[:, None]


# ------------------------------------------------------------------------------ main
if __name__ == "__main__":
    key = jax.random.PRNGKey(0)
    keys = jax.random.split(key, 10)
    kp = keys[0]

    adim, sdim, E, H = 4, 16, 32, 256            # action dim, state dim, embed, hidden
    params = init_params(kp, sdim, adim, embed_dim=E, hdim=H)
    packed = pack_params(params, adim, sdim, E, H)   # pack once, reuse across calls

    fwd = jax.jit(mlp_score_forward)

    # Case 1: tiny batch  -> no-grid, fully VMEM-resident path.
    # Case 2: medium batch -> 2 parallel grid steps (TB=152, padded to 304).
    # Case 3: large batch  -> TB=1024, 4 parallel grid steps.
    cases = []
    for idx, B in enumerate((8, 300, 4096)):
        kx, kt, kc = keys[1 + 3 * idx], keys[2 + 3 * idx], keys[3 + 3 * idx]
        xB = jax.random.normal(kx, (B, adim), jnp.float32)
        tB = jax.random.uniform(kt, (B,), jnp.float32, 0.05, 1.0)
        cB = jax.random.normal(kc, (B, sdim), jnp.float32)
        outB = jax.block_until_ready(fwd(packed, xB, tB, cB))
        cases.append((xB, tB, cB, outB))

    for xx, tt, cc, oo in cases:
        assert oo.shape == (xx.shape[0], adim)
        ref_m = reference_forward_bf16(params, xx, tt, cc)
        err_m = float(jnp.max(jnp.abs(oo - ref_m)))
        assert jnp.allclose(oo, ref_m, atol=5e-3, rtol=5e-3), f"bf16-matched err={err_m}"
        if xx.shape[0] <= 512:  # loose full-f32 sanity check on the smaller cases
            ref_f = reference_forward_f32(params, xx, tt, cc)
            err_f = float(jnp.max(jnp.abs(oo - ref_f)))
            assert jnp.allclose(oo, ref_f, atol=5e-2, rtol=5e-2), f"f32 err={err_f}"

    print("KERNEL_OK")
</pallas_src>

<mosaic_0001>
module attributes {stable_mosaic.version = 11 : i64} {
  func.func @kernel(%arg0: memref<8x128xf32, #tpu.memory_space<vmem>>, %arg1: memref<176x32xbf16, #tpu.memory_space<vmem>>, %arg2: memref<8x256xf32, #tpu.memory_space<vmem>>, %arg3: memref<160x256xbf16, #tpu.memory_space<vmem>>, %arg4: memref<2x256x256xbf16, #tpu.memory_space<vmem>>, %arg5: memref<256x128xbf16, #tpu.memory_space<vmem>>, %arg6: memref<8x128xf32, #tpu.memory_space<vmem>>) attributes {dimension_semantics = [], scalar_prefetch = 0 : i64, scratch_operands = 0 : i64, tpu.core_type = #tpu.core_type<tc>} {
    %c0 = arith.constant 0 : index
    %c0_0 = arith.constant 0 : index
    %0 = vector.load %arg0[%c0, %c0_0] : memref<8x128xf32, #tpu.memory_space<vmem>>, vector<8x128xf32>
    %1 = arith.truncf %0 : vector<8x128xf32> to vector<8x128xbf16>
    %2 = vector.extract_strided_slice %0 {offsets = [0, 4], sizes = [8, 1], strides = [1, 1]} : vector<8x128xf32> to vector<8x1xf32>
    %c0_1 = arith.constant 0 : index
    %c0_2 = arith.constant 0 : index
    %3 = vector.load %arg1[%c0_1, %c0_2] : memref<176x32xbf16, #tpu.memory_space<vmem>>, vector<176x32xbf16>
    %4 = vector.extract_strided_slice %3 {offsets = [0, 0], sizes = [16, 32], strides = [1, 1]} : vector<176x32xbf16> to vector<16x32xbf16>
    %5 = vector.extract_strided_slice %3 {offsets = [16, 0], sizes = [32, 32], strides = [1, 1]} : vector<176x32xbf16> to vector<32x32xbf16>
    %6 = vector.extract_strided_slice %3 {offsets = [48, 0], sizes = [128, 32], strides = [1, 1]} : vector<176x32xbf16> to vector<128x32xbf16>
    %c0_3 = arith.constant 0 : index
    %c0_4 = arith.constant 0 : index
    %7 = vector.load %arg2[%c0_3, %c0_4] : memref<8x256xf32, #tpu.memory_space<vmem>>, vector<8x256xf32>
    %8 = vector.extract_strided_slice %7 {offsets = [0, 0], sizes = [1, 32], strides = [1, 1]} : vector<8x256xf32> to vector<1x32xf32>
    %9 = vector.extract_strided_slice %7 {offsets = [1, 0], sizes = [1, 32], strides = [1, 1]} : vector<8x256xf32> to vector<1x32xf32>
    %10 = vector.extract_strided_slice %7 {offsets = [2, 0], sizes = [1, 8], strides = [1, 1]} : vector<8x256xf32> to vector<1x8xf32>
    %11 = vector.extract_strided_slice %7 {offsets = [3, 0], sizes = [1, 256], strides = [1, 1]} : vector<8x256xf32> to vector<1x256xf32>
    %12 = vector.extract_strided_slice %7 {offsets = [4, 0], sizes = [1, 256], strides = [1, 1]} : vector<8x256xf32> to vector<1x256xf32>
    %13 = vector.extract_strided_slice %7 {offsets = [5, 0], sizes = [1, 256], strides = [1, 1]} : vector<8x256xf32> to vector<1x256xf32>
    %14 = vector.extract_strided_slice %7 {offsets = [6, 0], sizes = [1, 128], strides = [1, 1]} : vector<8x256xf32> to vector<1x128xf32>
    %15 = vector.broadcast %2 : vector<8x1xf32> to vector<8x8xf32>
    %16 = vector.broadcast %10 : vector<1x8xf32> to vector<8x8xf32>
    %17 = arith.mulf %15, %16 : vector<8x8xf32>
    %cst = arith.constant 6.28318548 : f32
    %18 = vector.broadcast %cst : f32 to vector<8x8xf32>
    %19 = arith.mulf %17, %18 : vector<8x8xf32>
    %20 = math.sin %19 : vector<8x8xf32>
    %21 = math.cos %19 : vector<8x8xf32>
    %22 = arith.truncf %20 : vector<8x8xf32> to vector<8x8xbf16>
    %23 = vector.extract_strided_slice %4 {offsets = [0, 0], sizes = [8, 32], strides = [1, 1]} : vector<16x32xbf16> to vector<8x32xbf16>
    %cst_5 = arith.constant dense<0.000000e+00> : vector<8x32xf32>
    %24 = tpu.matmul %22, %23, %cst_5 {dimension_numbers = #tpu.dot_dimension_numbers<[1], [0], [0], [1], [0, 0, 1, 1], [], []>} : vector<8x8xbf16>, vector<8x32xbf16>, vector<8x32xf32> -> vector<8x32xf32>
    %25 = arith.truncf %21 : vector<8x8xf32> to vector<8x8xbf16>
    %26 = vector.extract_strided_slice %4 {offsets = [8, 0], sizes = [8, 32], strides = [1, 1]} : vector<16x32xbf16> to vector<8x32xbf16>
    %cst_6 = arith.constant dense<0.000000e+00> : vector<8x32xf32>
    %27 = tpu.matmul %25, %26, %cst_6 {dimension_numbers = #tpu.dot_dimension_numbers<[1], [0], [0], [1], [0, 0, 1, 1], [], []>} : vector<8x8xbf16>, vector<8x32xbf16>, vector<8x32xf32> -> vector<8x32xf32>
    %28 = arith.addf %24, %27 : vector<8x32xf32>
    %29 = vector.broadcast %8 : vector<1x32xf32> to vector<8x32xf32>
    %30 = arith.addf %28, %29 : vector<8x32xf32>
    %31 = arith.negf %30 : vector<8x32xf32>
    %32 = math.exp %31 : vector<8x32xf32>
    %cst_7 = arith.constant 1.000000e+00 : f32
    %33 = vector.broadcast %cst_7 : f32 to vector<8x32xf32>
    %34 = arith.addf %33, %32 : vector<8x32xf32>
    %35 = arith.divf %33, %34 : vector<8x32xf32>
    %36 = arith.mulf %30, %35 : vector<8x32xf32>
    %37 = arith.truncf %36 : vector<8x32xf32> to vector<8x32xbf16>
    %cst_8 = arith.constant dense<0.000000e+00> : vector<8x32xf32>
    %38 = tpu.matmul %37, %5, %cst_8 {dimension_numbers = #tpu.dot_dimension_numbers<[1], [0], [0], [1], [0, 0, 1, 1], [], []>} : vector<8x32xbf16>, vector<32x32xbf16>, vector<8x32xf32> -> vector<8x32xf32>
    %cst_9 = arith.constant dense<0.000000e+00> : vector<8x32xf32>
    %39 = tpu.matmul %1, %6, %cst_9 {dimension_numbers = #tpu.dot_dimension_numbers<[1], [0], [0], [1], [0, 0, 1, 1], [], []>} : vector<8x128xbf16>, vector<128x32xbf16>, vector<8x32xf32> -> vector<8x32xf32>
    %40 = arith.addf %38, %39 : vector<8x32xf32>
    %41 = vector.broadcast %9 : vector<1x32xf32> to vector<8x32xf32>
    %42 = arith.addf %40, %41 : vector<8x32xf32>
    %43 = arith.negf %42 : vector<8x32xf32>
    %44 = math.exp %43 : vector<8x32xf32>
    %cst_10 = arith.constant 1.000000e+00 : f32
    %45 = vector.broadcast %cst_10 : f32 to vector<8x32xf32>
    %46 = arith.addf %45, %44 : vector<8x32xf32>
    %47 = arith.divf %45, %46 : vector<8x32xf32>
    %48 = arith.mulf %42, %47 : vector<8x32xf32>
    %c0_11 = arith.constant 0 : index
    %c0_12 = arith.constant 0 : index
    %49 = vector.load %arg3[%c0_11, %c0_12] : memref<160x256xbf16, #tpu.memory_space<vmem>>, vector<160x256xbf16>
    %50 = vector.extract_strided_slice %49 {offsets = [0, 0], sizes = [128, 256], strides = [1, 1]} : vector<160x256xbf16> to vector<128x256xbf16>
    %cst_13 = arith.constant dense<0.000000e+00> : vector<8x256xf32>
    %51 = tpu.matmul %1, %50, %cst_13 {dimension_numbers = #tpu.dot_dimension_numbers<[1], [0], [0], [1], [0, 0, 1, 1], [], []>} : vector<8x128xbf16>, vector<128x256xbf16>, vector<8x256xf32> -> vector<8x256xf32>
    %52 = arith.truncf %48 : vector<8x32xf32> to vector<8x32xbf16>
    %53 = vector.extract_strided_slice %49 {offsets = [128, 0], sizes = [32, 256], strides = [1, 1]} : vector<160x256xbf16> to vector<32x256xbf16>
    %cst_14 = arith.constant dense<0.000000e+00> : vector<8x256xf32>
    %54 = tpu.matmul %52, %53, %cst_14 {dimension_numbers = #tpu.dot_dimension_numbers<[1], [0], [0], [1], [0, 0, 1, 1], [], []>} : vector<8x32xbf16>, vector<32x256xbf16>, vector<8x256xf32> -> vector<8x256xf32>
    %55 = arith.addf %51, %54 : vector<8x256xf32>
    %56 = vector.broadcast %11 : vector<1x256xf32> to vector<8x256xf32>
    %57 = arith.addf %55, %56 : vector<8x256xf32>
    %58 = arith.negf %57 : vector<8x256xf32>
    %59 = math.exp %58 : vector<8x256xf32>
    %cst_15 = arith.constant 1.000000e+00 : f32
    %60 = vector.broadcast %cst_15 : f32 to vector<8x256xf32>
    %61 = arith.addf %60, %59 : vector<8x256xf32>
    %62 = arith.divf %60, %61 : vector<8x256xf32>
    %63 = arith.mulf %57, %62 : vector<8x256xf32>
    %64 = arith.truncf %63 : vector<8x256xf32> to vector<8x256xbf16>
    %c0_16 = arith.constant 0 : index
    %c0_17 = arith.constant 0 : index
    %c0_18 = arith.constant 0 : index
    %65 = vector.load %arg4[%c0_16, %c0_17, %c0_18] : memref<2x256x256xbf16, #tpu.memory_space<vmem>>, vector<1x256x256xbf16>
    %66 = vector.shape_cast %65 : vector<1x256x256xbf16> to vector<256x256xbf16>
    %cst_19 = arith.constant dense<0.000000e+00> : vector<8x256xf32>
    %67 = tpu.matmul %64, %66, %cst_19 {dimension_numbers = #tpu.dot_dimension_numbers<[1], [0], [0], [1], [0, 0, 1, 1], [], []>} : vector<8x256xbf16>, vector<256x256xbf16>, vector<8x256xf32> -> vector<8x256xf32>
    %68 = vector.broadcast %12 : vector<1x256xf32> to vector<8x256xf32>
    %69 = arith.addf %67, %68 : vector<8x256xf32>
    %70 = arith.negf %69 : vector<8x256xf32>
    %71 = math.exp %70 : vector<8x256xf32>
    %cst_20 = arith.constant 1.000000e+00 : f32
    %72 = vector.broadcast %cst_20 : f32 to vector<8x256xf32>
    %73 = arith.addf %72, %71 : vector<8x256xf32>
    %74 = arith.divf %72, %73 : vector<8x256xf32>
    %75 = arith.mulf %69, %74 : vector<8x256xf32>
    %76 = arith.truncf %75 : vector<8x256xf32> to vector<8x256xbf16>
    %c1 = arith.constant 1 : index
    %c0_21 = arith.constant 0 : index
    %c0_22 = arith.constant 0 : index
    %77 = vector.load %arg4[%c1, %c0_21, %c0_22] : memref<2x256x256xbf16, #tpu.memory_space<vmem>>, vector<1x256x256xbf16>
    %78 = vector.shape_cast %77 : vector<1x256x256xbf16> to vector<256x256xbf16>
    %cst_23 = arith.constant dense<0.000000e+00> : vector<8x256xf32>
    %79 = tpu.matmul %76, %78, %cst_23 {dimension_numbers = #tpu.dot_dimension_numbers<[1], [0], [0], [1], [0, 0, 1, 1], [], []>} : vector<8x256xbf16>, vector<256x256xbf16>, vector<8x256xf32> -> vector<8x256xf32>
    %80 = vector.broadcast %13 : vector<1x256xf32> to vector<8x256xf32>
    %81 = arith.addf %79, %80 : vector<8x256xf32>
    %82 = arith.negf %81 : vector<8x256xf32>
    %83 = math.exp %82 : vector<8x256xf32>
    %cst_24 = arith.constant 1.000000e+00 : f32
    %84 = vector.broadcast %cst_24 : f32 to vector<8x256xf32>
    %85 = arith.addf %84, %83 : vector<8x256xf32>
    %86 = arith.divf %84, %85 : vector<8x256xf32>
    %87 = arith.mulf %81, %86 : vector<8x256xf32>
    %88 = arith.truncf %87 : vector<8x256xf32> to vector<8x256xbf16>
    %c0_25 = arith.constant 0 : index
    %c0_26 = arith.constant 0 : index
    %89 = vector.load %arg5[%c0_25, %c0_26] : memref<256x128xbf16, #tpu.memory_space<vmem>>, vector<256x128xbf16>
    %cst_27 = arith.constant dense<0.000000e+00> : vector<8x128xf32>
    %90 = tpu.matmul %88, %89, %cst_27 {dimension_numbers = #tpu.dot_dimension_numbers<[1], [0], [0], [1], [0, 0, 1, 1], [], []>} : vector<8x256xbf16>, vector<256x128xbf16>, vector<8x128xf32> -> vector<8x128xf32>
    %91 = vector.broadcast %14 : vector<1x128xf32> to vector<8x128xf32>
    %92 = arith.addf %90, %91 : vector<8x128xf32>
    %cst_28 = arith.constant -2.500000e-01 : f32
    %93 = vector.broadcast %cst_28 : f32 to vector<8x1xf32>
    %94 = arith.mulf %93, %2 : vector<8x1xf32>
    %95 = arith.mulf %94, %2 : vector<8x1xf32>
    %cst_29 = arith.constant 1.990000e+01 : f32
    %96 = vector.broadcast %cst_29 : f32 to vector<8x1xf32>
    %97 = arith.mulf %95, %96 : vector<8x1xf32>
    %cst_30 = arith.constant 5.000000e-01 : f32
    %98 = vector.broadcast %cst_30 : f32 to vector<8x1xf32>
    %99 = arith.mulf %98, %2 : vector<8x1xf32>
    %cst_31 = arith.constant 1.000000e-01 : f32
    %100 = vector.broadcast %cst_31 : f32 to vector<8x1xf32>
    %101 = arith.mulf %99, %100 : vector<8x1xf32>
    %102 = arith.subf %97, %101 : vector<8x1xf32>
    %cst_32 = arith.constant 2.000000e+00 : f32
    %103 = vector.broadcast %cst_32 : f32 to vector<8x1xf32>
    %104 = arith.mulf %103, %102 : vector<8x1xf32>
    %105 = math.exp %104 : vector<8x1xf32>
    %cst_33 = arith.constant 1.000000e+00 : f32
    %106 = vector.broadcast %cst_33 : f32 to vector<8x1xf32>
    %107 = arith.subf %106, %105 : vector<8x1xf32>
    %108 = math.sqrt %107 : vector<8x1xf32>
    %109 = tpu.reciprocal %108 {approx = true} : vector<8x1xf32> -> vector<8x1xf32>
    %110 = vector.broadcast %109 : vector<8x1xf32> to vector<8x128xf32>
    %111 = arith.mulf %92, %110 : vector<8x128xf32>
    %c0_34 = arith.constant 0 : index
    %c0_35 = arith.constant 0 : index
    %112 = vector.load %arg6[%c0_34, %c0_35] : memref<8x128xf32, #tpu.memory_space<vmem>>, vector<8x128xf32>
    tpu.vector_store %arg6[%c0_34, %c0_35], %111 {strides = array<i32>} : memref<8x128xf32, #tpu.memory_space<vmem>>, vector<8x128xf32>,
    return
  }
}

</mosaic_0001>

<bundles_post_ra>
// kernel: mlp_score_forward.1
= control target key start
LH: loop header
LB: loop body
LE: loop exit
PB: predicated region body
PF: predicated region fallthrough
CT: control target
= control target key end

     0   :  { %11 = vsyncpa [#allocation3], 0  ;;  %s2263_s0 = inlined_call_operand.vmem [shape: f32[8,128], index: 0, kind: input, shape index: {}]   ;;  %s2264_s1 = inlined_call_operand.vmem [shape: bf16[176,32], index: 1, kind: input, shape index: {}]   ;;  %s2265_s2 = inlined_call_operand.hbm [shape: f32[8,256], index: 2, kind: input, shape index: {}]   ;;  %s2266_s3 = inlined_call_operand.vmem [shape: bf16[160,256], index: 3, kind: input, shape index: {}]   ;;  %s2267_s4 = inlined_call_operand.hbm [shape: bf16[2,256,256], index: 4, kind: input, shape index: {}]   ;;  %s2268_s5 = inlined_call_operand.vmem [shape: bf16[256,128], index: 5, kind: input, shape index: {}]   ;;  %s2269_s6 = inlined_call_operand.vmem [shape: f32[8,128], index: 6, kind: output, shape index: {}]  }
   0x1   :  { %12 = vsyncpa [#allocation5], 0  ;;  %s1974_s21 = smov [#allocation2]   ;;  %s1975_s23 = smov [#allocation4]  }
   0x2   :  { %s23_s22 = sshll.u32 %s1974_s21, 4  ;;  %s34_s24 = sshll.u32 %s1975_s23, 4  ;;  %s24_s22 = int_to_ptr.vmem [resolvable:$true] %s23_s22  ;;  %s35_s24 = int_to_ptr.vmem [resolvable:$true] %s34_s24 }
   0x3   :  { %s1938_s25 = scalar_lea.vmem %s24_s22, 256  ;;  %p1943_p1 = scmp.lt.s32.totalorder %s24_s22, %s24_s22 }
   0x4   :  { %p1939_p0 = scmp.ne.s32.totalorder %s24_s22, %s1938_s25  ;;  %p1944_p2 = scmp.lt.s32.totalorder %s1938_s25, %s1938_s25 }
   0x6   :  { %p1945_p3 = por %p1944_p2, %p1943_p1 }
   0x8   :  { %p1946_p4 = pnand %p1945_p3, %p1939_p0 }
   0xa   :  { %1949 = shalt.err (!%p1946_p4)
}
   0xb   :  { %26 = dma.hbm_to_vmem [thread:$0]  %s2265_s2, 256, %s24_s22, [#allocation3]  }
   0xc   :  { %s1958_s28 = scalar_lea.vmem %s35_s24, 8192  ;;  %p1963_p6 = scmp.lt.s32.totalorder %s35_s24, %s35_s24 }
   0xd   :  { %p1959_p5 = scmp.ne.s32.totalorder %s35_s24, %s1958_s28  ;;  %p1964_p7 = scmp.lt.s32.totalorder %s1958_s28, %s1958_s28 }
   0xf   :  { %p1965_p8 = por %p1964_p7, %p1963_p6 }
  0x11   :  { %p1966_p9 = pnand %p1965_p8, %p1959_p5 }
  0x13   :  { %1969 = shalt.err (!%p1966_p9)
}
  0x14   :  { %s1976_s29 = smov 128   ;;  %s1977_s30 = smov 8  }
  0x15   :  { %40 = dma.hbm_to_vmem [thread:$0]  %s2267_s4, 8192, %s35_s24, [#allocation5], %s1976_s29, %s1976_s29, %s1977_s30  }
  0x16   :  { %1970 = dma.done.wait [#allocation3], 256  }
  0x17   :  { %1971 = vsyncadd [#allocation3], 4294967040 }
  0x18   :  { %1972 = dma.done.wait [#allocation5], 8192  }
  0x19   :  { %1973 = vsyncadd [#allocation5], 4294959104  ;;  %v1978_v0 = vmov 4   ;;  %v2032_v1 = vld [vmem:[%s2263_s0] sm:$0xff]  ;;  %vm300_vm2 = vcmask 1043456   ;;  %v1979_v19 = vmov 0.0   ;;  %v81_v21 = vlaneseq }
  0x1a   :  { %1735 = vset.pattern.permute.xlu0 %v1978_v0  ;;  %v1478_v2 = vmul.f32 -0.25, %v2032_v1  ;;  %v1481_v3 = vmul.f32 0.5, %v2032_v1  ;;  %v53_v18 = vld [vmem:[%s2264_s1 + $0x4] sm:$0xf]  ;;  %1677 = vmatprep.subr.bf16.mxu1 %v1979_v19  ;;  %vm1980_vm3 = vmmov 0  }
  0x1b   :  { %78 = vperm.xlu0 %1735, %v2032_v1   ;;  %v302_v20 = vsel %vm300_vm2, %v53_v18, 0  ;;  %1689 = vmatprep.subr.bf16.mxu0 %v1979_v19  ;;  %v2049_v22 = vshrl.u32 %v81_v21, 7  ;;  %v2052_v24 = vld [vmem:[#allocation2] sm:$0xff]  ;;  %v1981_v39 = vmov 683565275  }
  0x1c   :  { %v1479_v4 = vmul.f32 %v1478_v2, %v2032_v1  ;;  %v1482_v5 = vmul.f32 0.1, %v1481_v3  ;;  %1678 = vmatpush3.bf16.msra.mxu1 %v302_v20  ;;  %1679 = vmatprep.mubr.msk.bf16.mxu1 %vm1980_vm3, %v1979_v19  ;;  %v1982_v41 = vmov 2475754826   ;;  %v1983_v44 = vmov 2131351028  }
  0x1d   :  { %1683 = vmatprep.subr.bf16.mxu1 %v1979_v19  ;;  %1705 = vmatprep.mubr.msk.bf16.mxu0 %vm1980_vm3, %v1979_v19  ;;  %v83_v23 = vsub.s32 2, %v2049_v22  ;;  %v1984_v47 = vmov 2102212464   ;;  %v1985_v50 = vmov 920167782  }
  0x1e   :  { %v1480_v6 = vmul.f32 19.9, %v1479_v4  ;;  %v1986_v53 = vmov 1326507024  }
  0x1f   :  { %v84_v25 = vrot.slane %v2052_v24, %v83_v23 }
  0x20   :  { %v1483_v7 = vsub.f32 %v1480_v6, %v1482_v5 }
  0x22   :  { %v1484_v8 = vmul.f32 2.0, %v1483_v7 }
  0x24   :  { %v1485_v9 = vmul.f32 1.442695, %v1484_v8 }
  0x26   :  { %1888 = vpow2.f32 %v1485_v9 }
  0x33   :  { %v1889_v10 = vpop.eup %1888 }
  0x34   :  { %v1487_v11 = vsub.f32 1.0, %v1889_v10 }
  0x36   :  { %1890 = vrsqrt.f32 %v1487_v11  ;;  %vm1490_vm0 = vcmp.eq.f32.partialorder %v1487_v11, inf  ;;  %vm1492_vm1 = vcmp.eq.f32.partialorder %v1487_v11, 0.0  ;;  %v1493_v12 = vand.u32 2147483648, %v1487_v11 }
  0x43   :  { %v1891_v13 = vpop.eup %1890 }
  0x44   :  { %v1489_v14 = vmul.f32 %v1891_v13, %v1487_v11 }
  0x46   :  { %v1491_v15 = vsel %vm1490_vm0, %v1487_v11, %v1489_v14 }
  0x47   :  { %v1494_v16 = vsel %vm1492_vm1, %v1493_v12, %v1491_v15 }
  0x48   :  { %1892 = vrcp.f32 %v1494_v16 }
  0x55   :  { %v1893_v17 = vpop.eup %1892 }
  0x56   :  { %1498 = vperm.xlu0 %1735, %v1893_v17  }
  0x96   :  { %v79_v26 = vpop.permute.xlu0 %78 }
  0x97   :  { %v85_v27 = vmul.f32 %v84_v25, %v79_v26 }
  0x99   :  { %v2055_v28 = vmul.f32 6.2831855, %v85_v27 }
  0x9b   :  { %v90_v29 = vand.u32 2139095040, %v2055_v28  ;;  %v87_v33 = vand.u32 2147483647, %v2055_v28  ;;  %vm89_vm11 = vcmp.lt.s32.totalorder %v2055_v28, 0  ;;  %vm179_vm0 = vweird.f32 %v2055_v28 }
  0x9d   :  { %v91_v30 = vshrl.u32 %v90_v29, 23  ;;  %v94_v36 = vand.u32 8388607, %v87_v33  ;;  %vm88_vm12 = vcmp.le.f32.partialorder %v87_v33, 0.7853982 }
  0x9e   :  { %v52_v33 = vld [vmem:[%s2264_s1] sm:$0xf] }
  0x9f   :  { %v1509_v31 = vadd.s32 4294967169, %v91_v30  ;;  %v95_v55 = vor.u32 8388608, %v94_v36 }
  0xa1   :  { %v97_v32 = vadd.s32 1, %v1509_v31  ;;  %v135_v6 = vshll.u32 %v95_v55, 8 }
  0xa3   :  { %vm98_vm4 = vcmp.gt.s32.totalorder %v97_v32, 0 }
  0xa4   :  { %v99_v34 = vsel %vm98_vm4, %v97_v32, 0 }
  0xa5   :  { %v101_v35 = vand.u32 31, %v99_v34  ;;  %v100_v38 = vshrl.u32 %v99_v34, 5 }
  0xa7   :  { %v102_v37 = vsub.s32 32, %v101_v35  ;;  %v104_v40 = vshll.u32 %v1981_v39, %v101_v35  ;;  %v107_v42 = vshll.u32 %v1982_v41, %v101_v35  ;;  %v110_v46 = vshll.u32 %v1983_v44, %v101_v35 }
  0xa8   :  { %v113_v49 = vshll.u32 %v1984_v47, %v101_v35  ;;  %v116_v52 = vshll.u32 %v1985_v50, %v101_v35  ;;  %vm119_vm5 = vcmp.lt.s32.totalorder %v100_v38, 1  ;;  %vm122_vm6 = vcmp.lt.s32.totalorder %v100_v38, 4 }
  0xa9   :  { %v105_v43 = vshrl.u32 %v1982_v41, %v102_v37  ;;  %v108_v45 = vshrl.u32 %v1983_v44, %v102_v37  ;;  %v111_v48 = vshrl.u32 %v1984_v47, %v102_v37  ;;  %v114_v51 = vshrl.u32 %v1985_v50, %v102_v37 }
  0xaa   :  { %v117_v54 = vshrl.u32 %v1986_v53, %v102_v37  ;;  %v103_v0 = vshrl.u32 %v1981_v39, %v102_v37  ;;  %vm121_vm7 = vcmp.lt.s32.totalorder %v100_v38, 3  ;;  %vm120_vm8 = vcmp.lt.s32.totalorder %v100_v38, 2 }
  0xab   :  { %v106_v56 = vor.u32 %v105_v43, %v104_v40  ;;  %v109_v57 = vor.u32 %v108_v45, %v107_v42  ;;  %v112_v58 = vor.u32 %v111_v48, %v110_v46  ;;  %v115_v59 = vor.u32 %v114_v51, %v113_v49 }
  0xac   :  { %v118_v60 = vor.u32 %v117_v54, %v116_v52 }
  0xad   :  { %v124_v61 = vsel %vm122_vm6, %v112_v58, 2102212464  ;;  %v127_v62 = vsel %vm119_vm5, %v106_v56, %v109_v57  ;;  %v131_v63 = vsel %vm119_vm5, %v109_v57, %v112_v58  ;;  %v128_v2 = vsel %vm122_vm6, %v115_v59, 920167782 }
  0xae   :  { %v132_v3 = vsel %vm122_vm6, %v118_v60, 1326507024  ;;  %v129_v4 = vsel %vm121_vm7, %v112_v58, %v128_v2  ;;  %v123_v7 = vsel %vm119_vm5, %v103_v0, %v106_v56  ;;  %v125_v8 = vsel %vm121_vm7, %v109_v57, %v124_v61 }
  0xaf   :  { %v133_v5 = vsel %vm121_vm7, %v115_v59, %v132_v3  ;;  %v130_v9 = vsel %vm120_vm8, %v127_v62, %v129_v4  ;;  %v126_v15 = vsel %vm120_vm8, %v123_v7, %v125_v8  ;;  %vm296_vm5 = vcmask 64512   ;;  %v1736_v7 = vld [vmem:[%s2264_s1 + $0x50] sm:$0xff]   ;;  %v1737_v8 = vld [vmem:[%s2264_s1 + $0x48] sm:$0xff]  }
  0xb0   :  { %v134_v10 = vsel %vm120_vm8, %v131_v63, %v133_v5  ;;  %v2064_v13 = vmul.u32.u64.low %v135_v6, %v130_v9  ;;  %v2065_v14 = vmul.u32.u64.high %v135_v6, %v130_v9, %v2064_v13  ;;  %v142_v17 = vmul.u32 %v135_v6, %v126_v15  ;;  %1690 = vmatpush3.bf16.msra.mxu0 %v1736_v7  ;;  %v1739_v9 = vld [vmem:[%s2264_s1 + $0x38] sm:$0xff]   ;;  %v1769_v7 = vld [vmem:[%s2266_s3 + $0x24] ss:$8 sps:$4 sm:$0xff]  }
  0xb1   :  { %v2061_v11 = vmul.u32.u64.low %v135_v6, %v134_v10  ;;  %v2062_v12 = vmul.u32.u64.high %v135_v6, %v134_v10, %v2061_v11  ;;  %v348_v2 = vsel %vm300_vm2, %v52_v33, 0  ;;  %1691 = vmatprep.subr.bf16.mxu0 %v1979_v19  ;;  %v1740_v10 = vld [vmem:[%s2264_s1 + $0x30] sm:$0xff]   ;;  %v2125_v15 = vpack.c.bf16 %v2032_v1, %v2032_v1 }
  0xb2   :  { %v145_v16 = vadd.s32 1, %v2065_v14  ;;  %v1741_v11 = vld [vmem:[%s2264_s1 + $0x28] sm:$0xff]   ;;  %vm503_vm2 = vcmask 261120  }
  0xb3   :  { %vm144_vm9 = vc.u32 %v2062_v12, %v2064_v13  ;;  %v143_v34 = vadd.s32 %v2064_v13, %v2062_v12  ;;  %v1742_v12 = vld [vmem:[%s2264_s1 + $0x20] sm:$0xff]   ;;  %v1743_v13 = vld [vmem:[%s2264_s1 + $0x18] sm:$0xff]  }
  0xb4   :  { %v146_v18 = vsel %vm144_vm9, %v145_v16, %v2065_v14  ;;  %1692 = vmatpush3.bf16.msra.mxu0 %v1737_v8  ;;  %v1744_v14 = vld [vmem:[%s2264_s1 + $0x10] sm:$0xff]   ;;  %v1745_v16 = vld [vmem:[%s2264_s1 + $0x8] sm:$0xff]  }
  0xb5   :  { %v147_v20 = vadd.s32 %v146_v18, %v142_v17  ;;  %1693 = vmatprep.subr.bf16.mxu0 %v1979_v19  ;;  %v1767_v8 = vld [vmem:[%s2266_s3 + $0x20] ss:$8 sps:$4 sm:$0xff]  }
  0xb7   :  { %v148_v21 = vadd.s32 536870912, %v147_v20 }
  0xb9   :  { %v149_v23 = vshrl.u32 %v148_v21, 30 }
  0xbb   :  { %v150_v25 = vshll.u32 %v149_v23, 30  ;;  %v173_v49 = vsub.s32 4, %v149_v23 }
  0xbd   :  { %v151_v26 = vsub.s32 %v147_v20, %v150_v25  ;;  %v174_v50 = vsel %vm89_vm11, %v173_v49, %v149_v23  ;;  %v392_v20 = vsub.s32 0, %v2049_v22 }
  0xbe   :  { %v176_v51 = vsel %vm88_vm12, 0, %v174_v50 }
  0xbf   :  { %v153_v27 = vsub.s32 0, %v151_v26  ;;  %v180_v52 = vadd.s32 3, %v176_v51  ;;  %v284_v53 = vand.u32 3, %v176_v51  ;;  %v393_v25 = vrot.slane %v2052_v24, %v392_v20  ;;  %v1787_v20 = vld [vmem:[#allocation4 + $0x44] ss:$8 sps:$4 sm:$0xff]  }
  0xc1   :  { %v1510_v29 = vmin.u32 %v153_v27, %v151_v26  ;;  %v181_v56 = vand.u32 3, %v180_v52  ;;  %vm289_vm13 = vcmp.eq.s32.totalorder %v284_v53, 2  ;;  %vm286_vm14 = vcmp.eq.s32.totalorder %v284_v53, 0 }
  0xc2   :  { %vm285_vm15 = vcmp.lt.s32.totalorder %v284_v53, 2 }
  0xc3   :  { %v155_v30 = vclz %v1510_v29  ;;  %vm183_vm1 = vcmp.eq.s32.totalorder %v181_v56, 0  ;;  %vm186_vm4 = vcmp.eq.s32.totalorder %v181_v56, 2  ;;  %vm182_vm6 = vcmp.lt.s32.totalorder %v181_v56, 2 }
  0xc5   :  { %v1511_v31 = vadd.s32 4294967294, %v155_v30 }
  0xc7   :  { %vm1512_vm10 = vcmp.lt.s32.totalorder %v1511_v31, 0 }
  0xc8   :  { %v158_v32 = vsel %vm1512_vm10, 0, %v1511_v31 }
  0xc9   :  { %v159_v35 = vsub.s32 32, %v158_v32  ;;  %v163_v36 = vsub.s32 4294967266, %v158_v32  ;;  %v160_v37 = vshll.u32 %v151_v26, %v158_v32 }
  0xcb   :  { %v161_v38 = vshrl.u32 %v143_v34, %v159_v35  ;;  %v164_v39 = vadd.s32 127, %v163_v36 }
  0xcd   :  { %v162_v40 = vor.u32 %v161_v38, %v160_v37  ;;  %v165_v41 = vshll.u32 %v164_v39, 23 }
  0xcf   :  { %v166_v42 = vor.u32 4788187, %v165_v41  ;;  %v169_v44 = vcvt.s32.f32 %v162_v40 }
  0xd1   :  { %v167_v43 = vand.u32 2147483647, %v166_v42  ;;  %v1748_v42 = vld [vmem:[%s2266_s3 + $0x94] ss:$8 sps:$4 sm:$0xff]  }
  0xd3   :  { %v170_v45 = vmul.f32 %v169_v44, %v167_v43  ;;  %v1746_v43 = vld [vmem:[%s2266_s3 + $0x90] ss:$8 sps:$4 sm:$0xff]   ;;  %v1751_v44 = vld [vmem:[%s2266_s3 + $0x84] ss:$8 sps:$4 sm:$0xff]  }
  0xd5   :  { %v171_v46 = vxor.u32 2147483648, %v170_v45 }
  0xd7   :  { %v172_v47 = vsel %vm89_vm11, %v171_v46, %v170_v45  ;;  %v1749_v45 = vld [vmem:[%s2266_s3 + $0x80] ss:$8 sps:$4 sm:$0xff]   ;;  %v1754_v46 = vld [vmem:[%s2266_s3 + $0x74] ss:$8 sps:$4 sm:$0xff]  }
  0xd8   :  { %v175_v48 = vsel %vm88_vm12, %v2055_v28, %v172_v47  ;;  %v1738_v28 = vld [vmem:[%s2264_s1 + $0x40] sm:$0xff]   ;;  %v1987_v47 = vmov 0  }
  0xd9   :  { %1894 = vcosq.f32 %v175_v48  ;;  %1694 = vmatpush3.bf16.msra.mxu0 %v1738_v28  ;;  %v1772_v28 = vld [vmem:[%s2266_s3 + $0x14] ss:$8 sps:$4 sm:$0xff]  }
  0xda   :  { %1896 = vsinq.f32 %v175_v48  ;;  %1695 = vmatprep.subr.bf16.mxu0 %v1979_v19  ;;  %v549_v48 = vsub.s32 1, %v2049_v22 }
  0xdc   :  { %v550_v49 = vrot.slane %v2052_v24, %v549_v48  ;;  %v1826_v48 = vld [vmem:[#allocation4 + $0x174] ss:$8 sps:$4 sm:$0xff]  }
  0xdd   :  { %1696 = vmatpush3.bf16.msra.mxu0 %v1739_v9  ;;  %v1770_v9 = vld [vmem:[%s2266_s3 + $0x10] ss:$8 sps:$4 sm:$0xff]  }
  0xde   :  { %1697 = vmatprep.subr.bf16.mxu0 %v1979_v19 }
  0xe1   :  { %1698 = vmatpush3.bf16.msra.mxu0 %v1740_v10  ;;  %v1775_v10 = vld [vmem:[%s2266_s3 + $0x4] ss:$8 sps:$4 sm:$0xff]  }
  0xe2   :  { %1699 = vmatprep.subr.bf16.mxu0 %v1979_v19 }
  0xe5   :  { %1700 = vmatpush3.bf16.msra.mxu0 %v1741_v11  ;;  %v1773_v11 = vld [vmem:[%s2266_s3] ss:$8 sps:$4 sm:$0xff]  }
  0xe6   :  { %v1895_v54 = vpop.eup %1894  ;;  %1701 = vmatprep.subr.bf16.mxu0 %v1979_v19 }
  0xe7   :  { %v1897_v55 = vpop.eup %1896  ;;  %v187_v57 = vxor.u32 2147483648, %v1895_v54 }
  0xe8   :  { %v184_v58 = vxor.u32 2147483648, %v1897_v55 }
  0xe9   :  { %v291_v59 = vsel %vm289_vm13, %v187_v57, %v1897_v55  ;;  %v188_v63 = vsel %vm186_vm4, %v187_v57, %v1897_v55  ;;  %1702 = vmatpush3.bf16.msra.mxu0 %v1742_v12  ;;  %v1776_v12 = vld [vmem:[#allocation4 + $0x70] ss:$8 sps:$4 sm:$0xff]  }
  0xea   :  { %v288_v60 = vsel %vm286_vm14, %v1895_v54, %v184_v58  ;;  %v185_v62 = vsel %vm183_vm1, %v1895_v54, %v184_v58  ;;  %1703 = vmatprep.subr.bf16.mxu0 %v1979_v19 }
  0xeb   :  { %v292_v61 = vsel %vm285_vm15, %v288_v60, %v291_v59  ;;  %v189_v4 = vsel %vm182_vm6, %v185_v62, %v188_v63  ;;  %v1752_v60 = vld [vmem:[%s2266_s3 + $0x70] ss:$8 sps:$4 sm:$0xff]   ;;  %v1757_v62 = vld [vmem:[%s2266_s3 + $0x64] ss:$8 sps:$4 sm:$0xff]   ;;  %v1755_v63 = vld [vmem:[%s2266_s3 + $0x60] ss:$8 sps:$4 sm:$0xff]  }
  0xec   :  { %v293_v0 = vsel %vm179_vm0, nan, %v292_v61  ;;  %v190_v5 = vsel %vm179_vm0, nan, %v189_v4  ;;  %v1761_v4 = vld [vmem:[%s2266_s3 + $0x40] ss:$8 sps:$4 sm:$0xff]  }
  0xed   :  { %v295_v3 = vpack.c.bf16 %v293_v0, %v293_v0  ;;  %v294_v6 = vpack.c.bf16 %v190_v5, %v190_v5  ;;  %1704 = vmatpush3.bf16.msra.mxu0 %v1743_v13  ;;  %v1760_v0 = vld [vmem:[%s2266_s3 + $0x54] ss:$8 sps:$4 sm:$0xff]   ;;  %v1778_v13 = vld [vmem:[#allocation4 + $0x74] ss:$8 sps:$4 sm:$0xff]  }
  0xee   :  { %v1766_v5 = vld [vmem:[%s2266_s3 + $0x34] ss:$8 sps:$4 sm:$0xff]   ;;  %991 = vmatprep.subr.bf16.mxu0 %v1778_v13 }
  0xef   :  { %1680 = vmatmul.mubr.msk.bf16.vlgmr.msra.gmra.mxu1 %vm296_vm5, %v295_v3  ;;  %v1763_v3 = vld [vmem:[%s2266_s3 + $0x44] ss:$8 sps:$4 sm:$0xff]  }
  0xf0   :  { %1684 = vmatpush3.bf16.msra.mxu1 %v348_v2  ;;  %1685 = vmatprep.mubr.msk.bf16.mxu1 %vm1980_vm3, %v1979_v19  ;;  %v1758_v2 = vld [vmem:[%s2266_s3 + $0x50] ss:$8 sps:$4 sm:$0xff]  }
  0xf1   :  { %1709 = vmatprep.subr.bf16.mxu1 %v1979_v19  ;;  %1706 = vmatmul.mubr.bf16.vlgmr.msra.gmra.mxu0 %v2125_v15 }
  0xf2   :  { %992 = vmatpush1.bf16.msra.mxu0 %v1776_v12 }
  0xf7   :  { %1686 = vmatmul.mubr.msk.bf16.vlgmr.msra.gmra.mxu1 %vm296_vm5, %v294_v6  ;;  %v1764_v6 = vld [vmem:[%s2266_s3 + $0x30] ss:$8 sps:$4 sm:$0xff]  }
  0xf8   :  { %1713 = vmatprep.mubr.msk.bf16.mxu1 %vm1980_vm3, %v1979_v19  ;;  %1710 = vmatpush3.bf16.msra.mxu1 %v1744_v14  ;;  %v1781_v14 = vld [vmem:[#allocation4 + $0x64] ss:$8 sps:$4 sm:$0xff]  }
  0xf9   :  { %1711 = vmatprep.subr.bf16.mxu1 %v1979_v19  ;;  %993 = vmatprep.subr.bf16.mxu0 %v1781_v14 }
  0xfc   :  { %1712 = vmatpush3.bf16.msra.mxu1 %v1745_v16  ;;  %v1779_v16 = vld [vmem:[#allocation4 + $0x60] ss:$8 sps:$4 sm:$0xff]  }
  0xfd   :  { %615 = vmatprep.subr.bf16.mxu1 %v1748_v42  ;;  %994 = vmatpush1.bf16.msra.mxu0 %v1779_v16  ;;  %v1815_v42 = vld [vmem:[#allocation4 + $0xa0] ss:$8 sps:$4 sm:$0xff]  }
 0x1af   :  { %v338_v17 = vpop.f32.mrf.mxu1 }
 0x1b1   :  { %v1681_v18 = vpop.f32.mrf.mxu1  ;;  %v485_v38 = vpop.f32.mrf.mxu0 }
 0x1b2   :  { %v1782_v18 = vld [vmem:[#allocation4 + $0x50] ss:$8 sps:$4 sm:$0xff]  }
 0x1b3   :  { %v341_v21 = vpop.f32.mrf.mxu1  ;;  %v1707_v39 = vpop.f32.mrf.mxu0 }
 0x1b4   :  { %v1785_v21 = vld [vmem:[#allocation4 + $0x40] ss:$8 sps:$4 sm:$0xff]   ;;  %v1814_v39 = vld [vmem:[#allocation4 + $0xb4] ss:$8 sps:$4 sm:$0xff]  }
 0x1b5   :  { %v1682_v23 = vpop.f32.mrf.mxu1  ;;  %v488_v40 = vpop.f32.mrf.mxu0 }
 0x1b6   :  { %v1790_v23 = vld [vmem:[#allocation4 + $0x34] ss:$8 sps:$4 sm:$0xff]   ;;  %v1812_v40 = vld [vmem:[#allocation4 + $0xb0] ss:$8 sps:$4 sm:$0xff]  }
 0x1b7   :  { %v384_v1 = vpop.f32.mrf.mxu1  ;;  %v1708_v41 = vpop.f32.mrf.mxu0 }
 0x1b8   :  { %v385_v26 = vadd.f32 %v384_v1, %v338_v17  ;;  %v1784_v17 = vld [vmem:[#allocation4 + $0x54] ss:$8 sps:$4 sm:$0xff]   ;;  %v1791_v1 = vld [vmem:[#allocation4 + $0x20] ss:$8 sps:$4 sm:$0xff]   ;;  %v1817_v41 = vld [vmem:[#allocation4 + $0xa4] ss:$8 sps:$4 sm:$0xff]  }
 0x1b9   :  { %v1687_v27 = vpop.f32.mrf.mxu1  ;;  %995 = vmatprep.subr.bf16.mxu0 %v1784_v17 }
 0x1ba   :  { %v394_v29 = vadd.f32 %v393_v25, %v385_v26  ;;  %996 = vmatpush1.bf16.msra.mxu0 %v1782_v18  ;;  %v1788_v25 = vld [vmem:[#allocation4 + $0x30] ss:$8 sps:$4 sm:$0xff]   ;;  %v1796_v26 = vld [vmem:[#allocation4 + $0x14] ss:$8 sps:$4 sm:$0xff]  }
 0x1bb   :  { %v387_v30 = vpop.f32.mrf.mxu1  ;;  %997 = vmatprep.subr.bf16.mxu0 %v1787_v20  ;;  %v1794_v27 = vld [vmem:[#allocation4 + $0x10] ss:$8 sps:$4 sm:$0xff]  }
 0x1bc   :  { %v1519_v31 = vmul.f32 -1.442695, %v394_v29  ;;  %v1797_v30 = vld [vmem:[#allocation4] ss:$8 sps:$4 sm:$0xff]  }
 0x1bd   :  { %v1688_v19 = vpop.f32.mrf.mxu1 }
 0x1be   :  { %1898 = vpow2.f32 %v1519_v31  ;;  %998 = vmatpush1.bf16.msra.mxu0 %v1785_v21  ;;  %v1802_v31 = vld [vmem:[#allocation4 + $0xf4] ss:$8 sps:$4 sm:$0xff]   ;;  %v1800_v19 = vld [vmem:[#allocation4 + $0xf0] ss:$8 sps:$4 sm:$0xff]  }
 0x1bf   :  { %999 = vmatprep.subr.bf16.mxu0 %v1790_v23 }
 0x1c2   :  { %1000 = vmatpush1.bf16.msra.mxu0 %v1788_v25 }
 0x1cb   :  { %v1899_v32 = vpop.eup %1898 }
 0x1cc   :  { %v398_v34 = vadd.f32 1.0, %v1899_v32  ;;  %v1805_v32 = vld [vmem:[#allocation4 + $0xe4] ss:$8 sps:$4 sm:$0xff]  }
 0x1ce   :  { %1900 = vrcp.f32 %v398_v34  ;;  %v1803_v34 = vld [vmem:[#allocation4 + $0xe0] ss:$8 sps:$4 sm:$0xff]  }
 0x1db   :  { %v1901_v35 = vpop.eup %1900 }
 0x1dc   :  { %v401_v36 = vmul.f32 %v1901_v35, %v394_v29  ;;  %v1799_v29 = vld [vmem:[#allocation4 + $0x4] ss:$8 sps:$4 sm:$0xff]   ;;  %v1808_v35 = vld [vmem:[#allocation4 + $0xd4] ss:$8 sps:$4 sm:$0xff]  }
 0x1de   :  { %v402_v37 = vpack.c.bf16 %v401_v36, %v401_v36  ;;  %v1806_v36 = vld [vmem:[#allocation4 + $0xd0] ss:$8 sps:$4 sm:$0xff]  }
 0x1e0   :  { %1714 = vmatmul.mubr.msk.bf16.vlgmr.msra.gmra.mxu1 %vm503_vm2, %v402_v37  ;;  %v1811_v37 = vld [vmem:[#allocation4 + $0xc4] ss:$8 sps:$4 sm:$0xff]  }
 0x1e1   :  { %616 = vmatpush1.bf16.msra.mxu1 %v1746_v43  ;;  %635 = vmatprep.mubr.bf16.mxu1 %v1987_v47  ;;  %v1820_v43 = vld [vmem:[#allocation4 + $0x94] ss:$8 sps:$4 sm:$0xff]  }
 0x1e2   :  { %617 = vmatprep.subr.bf16.mxu1 %v1751_v44  ;;  %v1818_v44 = vld [vmem:[#allocation4 + $0x90] ss:$8 sps:$4 sm:$0xff]  }
 0x1e5   :  { %618 = vmatpush1.bf16.msra.mxu1 %v1749_v45  ;;  %v1823_v45 = vld [vmem:[#allocation4 + $0x84] ss:$8 sps:$4 sm:$0xff]  }
 0x1e6   :  { %724 = vmatprep.subr.bf16.mxu1 %v1754_v46  ;;  %v1821_v46 = vld [vmem:[#allocation4 + $0x80] ss:$8 sps:$4 sm:$0xff]  }
 0x2a0   :  { %v541_v50 = vpop.f32.mrf.mxu1 }
 0x2a1   :  { %v542_v51 = vadd.f32 %v541_v50, %v485_v38  ;;  %v1809_v38 = vld [vmem:[#allocation4 + $0xc0] ss:$8 sps:$4 sm:$0xff]  }
 0x2a2   :  { %v1715_v52 = vpop.f32.mrf.mxu1  ;;  %v1827_v50 = vld [vmem:[#allocation4 + $0x160] ss:$8 sps:$4 sm:$0xff]  }
 0x2a3   :  { %v551_v53 = vadd.f32 %v550_v49, %v542_v51  ;;  %v1829_v49 = vld [vmem:[#allocation4 + $0x164] ss:$8 sps:$4 sm:$0xff]   ;;  %v1832_v51 = vld [vmem:[#allocation4 + $0x154] ss:$8 sps:$4 sm:$0xff]   ;;  %v1830_v52 = vld [vmem:[#allocation4 + $0x150] ss:$8 sps:$4 sm:$0xff]  }
 0x2a4   :  { %v544_v54 = vpop.f32.mrf.mxu1 }
 0x2a5   :  { %v1531_v55 = vmul.f32 -1.442695, %v551_v53  ;;  %v1833_v54 = vld [vmem:[#allocation4 + $0x140] ss:$8 sps:$4 sm:$0xff]  }
 0x2a6   :  { %v1716_v56 = vpop.f32.mrf.mxu1 }
 0x2a7   :  { %1902 = vpow2.f32 %v1531_v55  ;;  %v1838_v55 = vld [vmem:[#allocation4 + $0x134] ss:$8 sps:$4 sm:$0xff]   ;;  %v1836_v56 = vld [vmem:[#allocation4 + $0x130] ss:$8 sps:$4 sm:$0xff]  }
 0x2b4   :  { %v1903_v57 = vpop.eup %1902 }
 0x2b5   :  { %v555_v58 = vadd.f32 1.0, %v1903_v57  ;;  %v1841_v57 = vld [vmem:[#allocation4 + $0x124] ss:$8 sps:$4 sm:$0xff]  }
 0x2b7   :  { %1904 = vrcp.f32 %v555_v58  ;;  %v1839_v58 = vld [vmem:[#allocation4 + $0x120] ss:$8 sps:$4 sm:$0xff]  }
 0x2c4   :  { %v1905_v59 = vpop.eup %1904 }
 0x2c5   :  { %v558_v33 = vmul.f32 %v1905_v59, %v551_v53  ;;  %v1835_v53 = vld [vmem:[#allocation4 + $0x144] ss:$8 sps:$4 sm:$0xff]  }
 0x2c7   :  { %v579_v61 = vpack.c.bf16 %v558_v33, %v558_v33 }
 0x2c9   :  { %1536 = vmatmul.mubr.msk.bf16.vlgmr.msra.gmra.mxu1 %vm503_vm2, %v579_v61 }
 0x2ca   :  { %725 = vmatpush1.bf16.msra.mxu1 %v1752_v60  ;;  %756 = vmatprep.mubr.bf16.mxu1 %v1987_v47  ;;  %v1824_v47 = vld [vmem:[#allocation4 + $0x170] ss:$8 sps:$4 sm:$0xff]  }
 0x2cb   :  { %726 = vmatprep.subr.bf16.mxu1 %v1757_v62  ;;  %v767_v62 = vsub.s32 3, %v2049_v22 }
 0x2ce   :  { %727 = vmatpush1.bf16.msra.mxu1 %v1755_v63  ;;  %v2200_v63 = vld [vmem:[#allocation2 + $0x8] sm:$0xff] }
 0x2cf   :  { %728 = vmatprep.subr.bf16.mxu1 %v1760_v0  ;;  %v768_v0 = vrot.slane %v2052_v24, %v767_v62 }
 0x2d2   :  { %729 = vmatpush1.bf16.msra.mxu1 %v1758_v2 }
 0x2d3   :  { %730 = vmatprep.subr.bf16.mxu1 %v1763_v3 }
 0x2d6   :  { %731 = vmatpush1.bf16.msra.mxu1 %v1761_v4  ;;  %v772_v4 = vrot.slane %v2200_v63, %v767_v62 }
 0x2d7   :  { %732 = vmatprep.subr.bf16.mxu1 %v1766_v5 }
 0x2da   :  { %733 = vmatpush1.bf16.msra.mxu1 %v1764_v6 }
 0x2db   :  { %734 = vmatprep.subr.bf16.mxu1 %v1769_v7 }
 0x2de   :  { %735 = vmatpush1.bf16.msra.mxu1 %v1767_v8 }
 0x2df   :  { %736 = vmatprep.subr.bf16.mxu1 %v1772_v28 }
 0x2e2   :  { %737 = vmatpush1.bf16.msra.mxu1 %v1770_v9 }
 0x2e3   :  { %738 = vmatprep.subr.bf16.mxu1 %v1775_v10 }
 0x2e6   :  { %739 = vmatpush1.bf16.msra.mxu1 %v1773_v11 }
 0x2e7   :  { %1249 = vmatprep.subr.bf16.mxu1 %v1826_v48 }
 0x2e9   :  { %757 = vmatmul.mubr.bf16.vlgmr.msra.gmra.mxu1 %v2125_v15  ;;  %v1793_v15 = vld [vmem:[#allocation4 + $0x24] ss:$8 sps:$4 sm:$0xff]  }
 0x2ea   :  { %1001 = vmatprep.subr.bf16.mxu0 %v1793_v15  ;;  %1250 = vmatpush1.bf16.msra.mxu1 %v1824_v47  ;;  %v1844_v15 = vld [vmem:[#allocation4 + $0x114] ss:$8 sps:$4 sm:$0xff]  }
 0x2eb   :  { %1002 = vmatpush1.bf16.msra.mxu0 %v1791_v1  ;;  %1251 = vmatprep.subr.bf16.mxu1 %v1829_v49  ;;  %v1842_v1 = vld [vmem:[#allocation4 + $0x110] ss:$8 sps:$4 sm:$0xff]  }
 0x2ec   :  { %1003 = vmatprep.subr.bf16.mxu0 %v1796_v26  ;;  %v1847_v26 = vld [vmem:[#allocation4 + $0x104] ss:$8 sps:$4 sm:$0xff]  }
 0x2ee   :  { %1252 = vmatpush1.bf16.msra.mxu1 %v1827_v50 }
 0x2ef   :  { %1004 = vmatpush1.bf16.msra.mxu0 %v1794_v27  ;;  %1253 = vmatprep.subr.bf16.mxu1 %v1832_v51  ;;  %v1845_v27 = vld [vmem:[#allocation4 + $0x100] ss:$8 sps:$4 sm:$0xff]  }
 0x2f0   :  { %1005 = vmatprep.subr.bf16.mxu0 %v1799_v29  ;;  %v1850_v29 = vld [vmem:[#allocation4 + $0x1f4] ss:$8 sps:$4 sm:$0xff]  }
 0x2f2   :  { %1254 = vmatpush1.bf16.msra.mxu1 %v1830_v52 }
 0x2f3   :  { %1006 = vmatpush1.bf16.msra.mxu0 %v1797_v30  ;;  %1255 = vmatprep.subr.bf16.mxu1 %v1835_v53  ;;  %v1848_v30 = vld [vmem:[#allocation4 + $0x1f0] ss:$8 sps:$4 sm:$0xff]  }
 0x2f4   :  { %1007 = vmatprep.subr.bf16.mxu0 %v1802_v31  ;;  %v1853_v31 = vld [vmem:[#allocation4 + $0x1e4] ss:$8 sps:$4 sm:$0xff]  }
 0x2f6   :  { %1256 = vmatpush1.bf16.msra.mxu1 %v1833_v54 }
 0x2f7   :  { %1008 = vmatpush2.bf16.msra.mxu0 %v1800_v19  ;;  %1257 = vmatprep.subr.bf16.mxu1 %v1838_v55  ;;  %v1851_v19 = vld [vmem:[#allocation4 + $0x1e0] ss:$8 sps:$4 sm:$0xff]  }
 0x2f8   :  { %1009 = vmatprep.subr.bf16.mxu0 %v1805_v32  ;;  %v1856_v32 = vld [vmem:[#allocation4 + $0x1d4] ss:$8 sps:$4 sm:$0xff]  }
 0x2fa   :  { %1258 = vmatpush1.bf16.msra.mxu1 %v1836_v56 }
 0x2fb   :  { %1010 = vmatpush2.bf16.msra.mxu0 %v1803_v34  ;;  %1259 = vmatprep.subr.bf16.mxu1 %v1841_v57  ;;  %v1854_v34 = vld [vmem:[#allocation4 + $0x1d0] ss:$8 sps:$4 sm:$0xff]  }
 0x2fc   :  { %1011 = vmatprep.subr.bf16.mxu0 %v1808_v35  ;;  %v1859_v35 = vld [vmem:[#allocation4 + $0x1c4] ss:$8 sps:$4 sm:$0xff]  }
 0x2fe   :  { %1260 = vmatpush1.bf16.msra.mxu1 %v1839_v58 }
 0x2ff   :  { %1012 = vmatpush2.bf16.msra.mxu0 %v1806_v36  ;;  %1261 = vmatprep.subr.bf16.mxu1 %v1844_v15  ;;  %v1857_v36 = vld [vmem:[#allocation4 + $0x1c0] ss:$8 sps:$4 sm:$0xff]  }
 0x300   :  { %1013 = vmatprep.subr.bf16.mxu0 %v1811_v37  ;;  %v1862_v37 = vld [vmem:[#allocation4 + $0x1b4] ss:$8 sps:$4 sm:$0xff]  }
 0x302   :  { %1262 = vmatpush1.bf16.msra.mxu1 %v1842_v1 }
 0x303   :  { %1014 = vmatpush2.bf16.msra.mxu0 %v1809_v38  ;;  %1263 = vmatprep.subr.bf16.mxu1 %v1847_v26  ;;  %v1860_v38 = vld [vmem:[#allocation4 + $0x1b0] ss:$8 sps:$4 sm:$0xff]  }
 0x304   :  { %1015 = vmatprep.subr.bf16.mxu0 %v1814_v39  ;;  %v1865_v39 = vld [vmem:[#allocation4 + $0x1a4] ss:$8 sps:$4 sm:$0xff]  }
 0x306   :  { %1264 = vmatpush1.bf16.msra.mxu1 %v1845_v27 }
 0x307   :  { %1016 = vmatpush2.bf16.msra.mxu0 %v1812_v40  ;;  %1265 = vmatprep.subr.bf16.mxu1 %v1850_v29  ;;  %v1863_v40 = vld [vmem:[#allocation4 + $0x1a0] ss:$8 sps:$4 sm:$0xff]  }
 0x308   :  { %1017 = vmatprep.subr.bf16.mxu0 %v1817_v41  ;;  %v1868_v41 = vld [vmem:[#allocation4 + $0x194] ss:$8 sps:$4 sm:$0xff]  }
 0x30a   :  { %1266 = vmatpush2.bf16.msra.mxu1 %v1848_v30 }
 0x30b   :  { %1018 = vmatpush2.bf16.msra.mxu0 %v1815_v42  ;;  %1267 = vmatprep.subr.bf16.mxu1 %v1853_v31  ;;  %v1866_v42 = vld [vmem:[#allocation4 + $0x190] ss:$8 sps:$4 sm:$0xff]  }
 0x30c   :  { %1019 = vmatprep.subr.bf16.mxu0 %v1820_v43  ;;  %v1871_v43 = vld [vmem:[#allocation4 + $0x184] ss:$8 sps:$4 sm:$0xff]  }
 0x30e   :  { %1268 = vmatpush2.bf16.msra.mxu1 %v1851_v19 }
 0x30f   :  { %1020 = vmatpush2.bf16.msra.mxu0 %v1818_v44  ;;  %1269 = vmatprep.subr.bf16.mxu1 %v1856_v32  ;;  %v1869_v44 = vld [vmem:[#allocation4 + $0x180] ss:$8 sps:$4 sm:$0xff]  }
 0x310   :  { %1021 = vmatprep.subr.bf16.mxu0 %v1823_v45  ;;  %v825_v45 = vsub.s32 4, %v2049_v22 }
 0x312   :  { %1270 = vmatpush2.bf16.msra.mxu1 %v1854_v34  ;;  %v830_v47 = vrot.slane %v2200_v63, %v825_v45 }
 0x313   :  { %1022 = vmatpush2.bf16.msra.mxu0 %v1821_v46  ;;  %1271 = vmatprep.subr.bf16.mxu1 %v1859_v35  ;;  %v826_v46 = vrot.slane %v2052_v24, %v825_v45 }
 0x316   :  { %1272 = vmatpush2.bf16.msra.mxu1 %v1857_v36 }
 0x317   :  { %1273 = vmatprep.subr.bf16.mxu1 %v1862_v37 }
 0x31a   :  { %1274 = vmatpush2.bf16.msra.mxu1 %v1860_v38 }
 0x31b   :  { %1275 = vmatprep.subr.bf16.mxu1 %v1865_v39 }
 0x31e   :  { %1276 = vmatpush2.bf16.msra.mxu1 %v1863_v40 }
 0x31f   :  { %1277 = vmatprep.subr.bf16.mxu1 %v1868_v41  ;;  %v1340_v41 = vsub.s32 6, %v2049_v22 }
 0x322   :  { %1278 = vmatpush2.bf16.msra.mxu1 %v1866_v42 }
 0x323   :  { %1279 = vmatprep.subr.bf16.mxu1 %v1871_v43  ;;  %v1341_v43 = vrot.slane %v2052_v24, %v1340_v41 }
 0x326   :  { %1280 = vmatpush2.bf16.msra.mxu1 %v1869_v44 }
 0x389   :  { %v637_v59 = vpop.f32.mrf.mxu1 }
 0x38b   :  { %v639_v33 = vpop.f32.mrf.mxu1 }
 0x38d   :  { %v641_v60 = vpop.f32.mrf.mxu1 }
 0x38f   :  { %v642_v61 = vpop.f32.mrf.mxu1 }
 0x3a9   :  { %v758_v2 = vpop.f32.mrf.mxu1 }
 0x3aa   :  { %v759_v3 = vadd.f32 %v758_v2, %v637_v59 }
 0x3ab   :  { %v760_v5 = vpop.f32.mrf.mxu1 }
 0x3ac   :  { %v773_v6 = vadd.f32 %v768_v0, %v759_v3  ;;  %v761_v7 = vadd.f32 %v760_v5, %v639_v33  ;;  %v1872_v3 = vld [vmem:[%s2268_s5 + $0x78] sm:$0xff]   ;;  %v1874_v5 = vld [vmem:[%s2268_s5 + $0x70] sm:$0xff]  }
 0x3ad   :  { %v762_v8 = vpop.f32.mrf.mxu1  ;;  %1655 = vmatprep.subr.bf16.mxu0 %v1872_v3 }
 0x3ae   :  { %v1553_v28 = vmul.f32 -1.442695, %v773_v6  ;;  %v774_v9 = vadd.f32 %v772_v4, %v761_v7  ;;  %v1873_v4 = vld [vmem:[%s2268_s5 + $0x38] sm:$0xff]   ;;  %v1876_v7 = vld [vmem:[%s2268_s5 + $0x68] sm:$0xff]  }
 0x3af   :  { %v763_v10 = vpop.f32.mrf.mxu1  ;;  %v1877_v8 = vld [vmem:[%s2268_s5 + $0x28] sm:$0xff]  }
 0x3b0   :  { %1906 = vpow2.f32 %v1553_v28  ;;  %v1554_v11 = vmul.f32 -1.442695, %v774_v9  ;;  %v1878_v28 = vld [vmem:[%s2268_s5 + $0x60] sm:$0xff]   ;;  %v1880_v10 = vld [vmem:[%s2268_s5 + $0x58] sm:$0xff]  }
 0x3b2   :  { %1908 = vpow2.f32 %v1554_v11  ;;  %v1881_v11 = vld [vmem:[%s2268_s5 + $0x18] sm:$0xff]  }
 0x3bd   :  { %v1907_v12 = vpop.eup %1906 }
 0x3be   :  { %v781_v13 = vadd.f32 1.0, %v1907_v12  ;;  %v1882_v12 = vld [vmem:[%s2268_s5 + $0x50] sm:$0xff]  }
 0x3bf   :  { %v1909_v14 = vpop.eup %1908 }
 0x3c0   :  { %1910 = vrcp.f32 %v781_v13  ;;  %v782_v16 = vadd.f32 1.0, %v1909_v14  ;;  %v1883_v13 = vld [vmem:[%s2268_s5 + $0x10] sm:$0xff]   ;;  %v1884_v14 = vld [vmem:[%s2268_s5 + $0x48] sm:$0xff]  }
 0x3c2   :  { %1912 = vrcp.f32 %v782_v16  ;;  %v1885_v16 = vld [vmem:[%s2268_s5 + $0x8] sm:$0xff]  }
 0x3cd   :  { %v1911_v17 = vpop.eup %1910 }
 0x3ce   :  { %v787_v20 = vmul.f32 %v1911_v17, %v773_v6  ;;  %v1875_v6 = vld [vmem:[%s2268_s5 + $0x30] sm:$0xff]   ;;  %v1886_v17 = vld [vmem:[%s2268_s5 + $0x40] sm:$0xff]  }
 0x3cf   :  { %v1913_v18 = vpop.eup %1912 }
 0x3d0   :  { %v788_v21 = vmul.f32 %v1913_v18, %v774_v9  ;;  %v789_v25 = vpack.c.bf16 %v787_v20, %v787_v20  ;;  %v1879_v9 = vld [vmem:[%s2268_s5 + $0x20] sm:$0xff]   ;;  %v1083_v20 = vsub.s32 5, %v2049_v22 }
 0x3d1   :  { %v1887_v18 = vld [vmem:[%s2268_s5] sm:$0xff]  }
 0x3d2   :  { %v790_v23 = vpack.c.bf16 %v788_v21, %v788_v21  ;;  %v1084_v21 = vrot.slane %v2052_v24, %v1083_v20 }
 0x3d4   :  { %1023 = vmatprep.mubr.bf16.mxu0 %v790_v23  ;;  %v1088_v23 = vrot.slane %v2200_v63, %v1083_v20 }
 0x3d5   :  { %1024 = vmatmul.mubr.bf16.vlgmr.msra.gmra.mxu0 %v789_v25 }
 0x3d6   :  { %1656 = vmatpush3.bf16.msra.mxu0 %v1873_v4 }
 0x3d7   :  { %1657 = vmatprep.subr.bf16.mxu0 %v1874_v5 }
 0x3da   :  { %1658 = vmatpush3.bf16.msra.mxu0 %v1875_v6 }
 0x3db   :  { %1659 = vmatprep.subr.bf16.mxu0 %v1876_v7 }
 0x3de   :  { %1660 = vmatpush3.bf16.msra.mxu0 %v1877_v8 }
 0x3df   :  { %1661 = vmatprep.subr.bf16.mxu0 %v1878_v28 }
 0x3e2   :  { %1662 = vmatpush3.bf16.msra.mxu0 %v1879_v9 }
 0x3e3   :  { %1663 = vmatprep.subr.bf16.mxu0 %v1880_v10 }
 0x3e6   :  { %1664 = vmatpush3.bf16.msra.mxu0 %v1881_v11 }
 0x3e7   :  { %1665 = vmatprep.subr.bf16.mxu0 %v1882_v12 }
 0x3ea   :  { %1666 = vmatpush3.bf16.msra.mxu0 %v1883_v13 }
 0x3eb   :  { %1667 = vmatprep.subr.bf16.mxu0 %v1884_v14 }
 0x3ee   :  { %1668 = vmatpush3.bf16.msra.mxu0 %v1885_v16 }
 0x3ef   :  { %1669 = vmatprep.subr.bf16.mxu0 %v1886_v17 }
 0x3f2   :  { %1670 = vmatpush3.bf16.msra.mxu0 %v1887_v18 }
 0x495   :  { %v1025_v48 = vpop.f32.mrf.mxu0 }
 0x496   :  { %v1026_v49 = vadd.f32 %v1025_v48, %v826_v46  ;;  %v1499_v48 = vpop.permute.xlu0 %1498 }
 0x497   :  { %v1027_v50 = vpop.f32.mrf.mxu0 }
 0x498   :  { %v1587_v51 = vmul.f32 -1.442695, %v1026_v49  ;;  %v1028_v52 = vadd.f32 %v1027_v50, %v830_v47 }
 0x499   :  { %v1029_v53 = vpop.f32.mrf.mxu0 }
 0x49a   :  { %1914 = vpow2.f32 %v1587_v51  ;;  %v1588_v54 = vmul.f32 -1.442695, %v1028_v52 }
 0x49b   :  { %v1030_v55 = vpop.f32.mrf.mxu0 }
 0x49c   :  { %1916 = vpow2.f32 %v1588_v54 }
 0x4a7   :  { %v1915_v56 = vpop.eup %1914 }
 0x4a8   :  { %v1038_v57 = vadd.f32 1.0, %v1915_v56 }
 0x4a9   :  { %v1917_v58 = vpop.eup %1916 }
 0x4aa   :  { %1918 = vrcp.f32 %v1038_v57  ;;  %v1039_v59 = vadd.f32 1.0, %v1917_v58 }
 0x4ac   :  { %1920 = vrcp.f32 %v1039_v59 }
 0x4b7   :  { %v1919_v33 = vpop.eup %1918 }
 0x4b8   :  { %v1044_v61 = vmul.f32 %v1919_v33, %v1026_v49 }
 0x4b9   :  { %v1921_v60 = vpop.eup %1920 }
 0x4ba   :  { %v1045_v62 = vmul.f32 %v1921_v60, %v1028_v52  ;;  %v1046_v2 = vpack.c.bf16 %v1044_v61, %v1044_v61 }
 0x4bc   :  { %v1047_v0 = vpack.c.bf16 %v1045_v62, %v1045_v62 }
 0x4be   :  { %1281 = vmatprep.mubr.bf16.mxu1 %v1047_v0 }
 0x4bf   :  { %1282 = vmatmul.mubr.bf16.vlgmr.msra.gmra.mxu1 %v1046_v2 }
 0x57f   :  { %v1283_v25 = vpop.f32.mrf.mxu1 }
 0x580   :  { %v1284_v15 = vadd.f32 %v1283_v25, %v1084_v21 }
 0x581   :  { %v1285_v1 = vpop.f32.mrf.mxu1 }
 0x582   :  { %v1621_v26 = vmul.f32 -1.442695, %v1284_v15  ;;  %v1286_v27 = vadd.f32 %v1285_v1, %v1088_v23 }
 0x583   :  { %v1287_v29 = vpop.f32.mrf.mxu1 }
 0x584   :  { %1922 = vpow2.f32 %v1621_v26  ;;  %v1622_v30 = vmul.f32 -1.442695, %v1286_v27 }
 0x585   :  { %v1288_v31 = vpop.f32.mrf.mxu1 }
 0x586   :  { %1924 = vpow2.f32 %v1622_v30 }
 0x591   :  { %v1923_v19 = vpop.eup %1922 }
 0x592   :  { %v1296_v32 = vadd.f32 1.0, %v1923_v19 }
 0x593   :  { %v1925_v34 = vpop.eup %1924 }
 0x594   :  { %1926 = vrcp.f32 %v1296_v32  ;;  %v1297_v35 = vadd.f32 1.0, %v1925_v34 }
 0x596   :  { %1928 = vrcp.f32 %v1297_v35 }
 0x5a1   :  { %v1927_v36 = vpop.eup %1926 }
 0x5a2   :  { %v1302_v38 = vmul.f32 %v1927_v36, %v1284_v15 }
 0x5a3   :  { %v1929_v37 = vpop.eup %1928 }
 0x5a4   :  { %v1303_v63 = vmul.f32 %v1929_v37, %v1286_v27  ;;  %v1304_v40 = vpack.c.bf16 %v1302_v38, %v1302_v38 }
 0x5a6   :  { %v1305_v39 = vpack.c.bf16 %v1303_v63, %v1303_v63 }
 0x5a8   :  { %1470 = vmatprep.mubr.bf16.mxu0 %v1305_v39 }
 0x5a9   :  { %1471 = vmatmul.mubr.bf16.vlgmr.msra.gmra.mxu0 %v1304_v40 }
 0x669   :  { %v1671_v42 = vpop.f32.mrf.mxu0 }
 0x66b   :  { %v1672_v44 = vpop.f32.mrf.mxu0 }
 0x66c   :  { %v1673_v45 = vadd.f32 %v1672_v44, %v1671_v42 }
 0x66d   :  { %v1674_v46 = vpop.f32.mrf.mxu0 }
 0x66e   :  { %v1473_v47 = vadd.f32 %v1673_v45, %v1341_v43 }
 0x66f   :  { %v1675_v49 = vpop.f32.mrf.mxu0 }
 0x670   :  { %v1501_v50 = vmul.f32 %v1499_v48, %v1473_v47 }
 0x672   :  { %1502 = vst [vmem:[%s2269_s6] sm:$0xff] %v1501_v50 }
 0x673   :  { %1507 = vsyncpa [#allocation3], 1 }
 0x674   :  { %1508 = vsyncpa [#allocation5], 1 }

</bundles_post_ra>
